<compile_context>
chip_gen: v5e
topology: v5e:2x2
jax: 0.10.0
libtpu: 0.0.40
codegen_flags: <defaults>
</compile_context>

<pallas_src>
import functools
import math

import jax
import jax.numpy as jnp
from jax.experimental import pallas as pl
from jax.experimental.pallas import tpu as pltpu


# ----------------------------------------------------------------------------
# Helpers
# ----------------------------------------------------------------------------
def _pick_tile(size, max_tile):
    """Largest divisor of `size` that is a multiple of 8 and <= max_tile."""
    cap = min(max_tile, size)
    for t in range(cap - cap % 8, 7, -8):
        if size % t == 0:
            return t
    return size  # fall back to the full (untiled) extent -- still a valid block


def _vmem_limit_bytes():
    try:
        cap = pltpu.get_tpu_info().vmem_capacity_bytes
    except Exception:
        cap = 64 * 1024 * 1024          # conservative (v7x-sized) fallback
    return int(min(100 * 2**20, max(32 * 2**20, cap * 3 // 4)))


# ----------------------------------------------------------------------------
# Kernel 1: full-width linear projection  y = (x @ W + b) * scale
# ----------------------------------------------------------------------------
def _linear_kernel(scale, x_ref, w_ref, b_ref, o_ref):
    y = jnp.dot(x_ref[...], w_ref[...], preferred_element_type=jnp.float32)
    y = y + b_ref[...]
    if scale != 1.0:
        y = y * scale
    o_ref[...] = y.astype(o_ref.dtype)


def _pallas_linear(x, w, b, *, scale=1.0, block_rows=256,
                   out_dtype=jnp.bfloat16):
    """(B, S, D) @ (D, F) + b over a (batch, row-tile) grid, full MXU width."""
    B, S, D = x.shape
    F = w.shape[1]
    ts = _pick_tile(S, block_rows)
    return pl.pallas_call(
        functools.partial(_linear_kernel, scale),
        out_shape=jax.ShapeDtypeStruct((B, S, F), out_dtype),
        grid=(B, S // ts),
        in_specs=[
            pl.BlockSpec((pl.Squeezed(), ts, D), lambda bi, si: (bi, si, 0)),
            pl.BlockSpec((D, F), lambda bi, si: (0, 0)),
            pl.BlockSpec((1, F), lambda bi, si: (0, 0)),
        ],
        out_specs=pl.BlockSpec((pl.Squeezed(), ts, F),
                               lambda bi, si: (bi, si, 0)),
        compiler_params=pltpu.CompilerParams(
            dimension_semantics=("parallel", "parallel"),
            vmem_limit_bytes=_vmem_limit_bytes(),
        ),
    )(x.astype(jnp.bfloat16), w.astype(jnp.bfloat16), b.astype(jnp.float32))


# ----------------------------------------------------------------------------
# Kernel 2: attention core + fused output projection
# ----------------------------------------------------------------------------
def _attention_kernel(q_ref, k_ref, v_ref, bias_ref, wo_ref, bo_ref,
                      out_ref, attn_ref=None):
    # q_ref:  (H, tq, d) bf16 (already scaled by 1/sqrt(d))
    # k_ref:  (H, Sk, d) bf16      v_ref: (H, Sk, d) bf16
    # bias_ref: (1, Sk) f32 additive key-padding bias
    # wo_ref: (H, d, D) bf16       bo_ref: (1, D) f32
    # out_ref: (tq, D) f32         attn_ref: (H, tq, Sk) (optional, bf16)
    H = q_ref.shape[0]

    # Head-batched QK^T on the MXU, f32 accumulation, + hoisted mask bias.
    s = jnp.einsum("hqd,hkd->hqk", q_ref[...], k_ref[...],
                   preferred_element_type=jnp.float32)
    s = s + bias_ref[...][None]                       # (1, 1, Sk) broadcast

    # Numerically stable softmax; exact normalization (probabilities are
    # returned to the caller, so rows must sum to 1).
    s = s - jnp.max(s, axis=-1, keepdims=True)
    p = jnp.exp(s)
    p = p * pl.reciprocal(jnp.sum(p, axis=-1, keepdims=True), approx=False)

    if attn_ref is not None:
        attn_ref[...] = p.astype(attn_ref.dtype)      # bf16 store by default

    # Head-batched P @ V -> (H, tq, d), bf16 for the next MXU pass.
    ctx = jnp.einsum("hqk,hkd->hqd", p.astype(jnp.bfloat16), v_ref[...],
                     preferred_element_type=jnp.float32).astype(jnp.bfloat16)

    # Fused output projection: concat(heads) @ Wo == sum_h ctx_h @ Wo_h.
    # Per-head MXU matmuls accumulated into a single (tq, D) f32 accumulator
    # (no (H, tq, D) f32 intermediate, no in-kernel head-concat relayout).
    acc = jnp.dot(ctx[0], wo_ref[0], preferred_element_type=jnp.float32)
    for h in range(1, H):
        acc = acc + jnp.dot(ctx[h], wo_ref[h],
                            preferred_element_type=jnp.float32)
    out_ref[...] = acc + bo_ref[...]


# ----------------------------------------------------------------------------
# Wrapper
# ----------------------------------------------------------------------------
def multi_head_attention(pre_q, pre_k, pre_v, params, num_heads, mask=None, *,
                         block_q=128, attn_dtype=jnp.bfloat16,
                         return_attn=True, permute_attn=False):
    B, Sq, D = pre_q.shape
    Sk = pre_k.shape[1]
    H = num_heads
    d = D // H
    scale = 1.0 / math.sqrt(d)

    # QKV projections: full-width GEMMs computed exactly once (not per q-tile),
    # with the 1/sqrt(d) scale folded into Q.
    q = _pallas_linear(pre_q, params["wq"], params["bq"], scale=scale)
    k = _pallas_linear(pre_k, params["wk"], params["bk"])
    v = _pallas_linear(pre_v, params["wv"], params["bv"])

    # Head split as one cheap HBM relayout (XLA), outside the kernels.
    qh = q.reshape(B, Sq, H, d).transpose(0, 2, 1, 3)      # (B, H, Sq, d) bf16
    kh = k.reshape(B, Sk, H, d).transpose(0, 2, 1, 3)
    vh = v.reshape(B, Sk, H, d).transpose(0, 2, 1, 3)

    # Hoisted additive key-padding mask bias (B, 1, Sk).
    if mask is None:
        bias = jnp.zeros((B, 1, Sk), jnp.float32)
    else:
        m = mask if mask.ndim == 3 else mask[:, None, :]
        assert m.shape == (B, 1, Sk), "only key-padding masks are supported"
        bias = jnp.where(m == 0, -1e9, 0.0).astype(jnp.float32)

    wo_heads = params["wo"].astype(jnp.bfloat16).reshape(H, d, D)
    bo = params["bo"].astype(jnp.float32)

    tq = _pick_tile(Sq, block_q)
    grid = (B, Sq // tq)

    out_spec = pl.BlockSpec((pl.Squeezed(), tq, D), lambda b, qi: (b, qi, 0))
    out_struct = jax.ShapeDtypeStruct((B, Sq, D), jnp.float32)
    if return_attn:
        out_shape = (out_struct,
                     jax.ShapeDtypeStruct((B, H, Sq, Sk), attn_dtype))
        out_specs = (out_spec,
                     pl.BlockSpec((pl.Squeezed(), H, tq, Sk),
                                  lambda b, qi: (b, 0, qi, 0)))
    else:
        out_shape = out_struct
        out_specs = out_spec

    result = pl.pallas_call(
        _attention_kernel,
        out_shape=out_shape,
        grid=grid,
        in_specs=[
            pl.BlockSpec((pl.Squeezed(), H, tq, d), lambda b, qi: (b, 0, qi, 0)),
            pl.BlockSpec((pl.Squeezed(), H, Sk, d), lambda b, qi: (b, 0, 0, 0)),
            pl.BlockSpec((pl.Squeezed(), H, Sk, d), lambda b, qi: (b, 0, 0, 0)),
            pl.BlockSpec((pl.Squeezed(), 1, Sk), lambda b, qi: (b, 0, 0)),
            pl.BlockSpec((H, d, D), lambda b, qi: (0, 0, 0)),
            pl.BlockSpec((1, D), lambda b, qi: (0, 0)),
        ],
        out_specs=out_specs,
        compiler_params=pltpu.CompilerParams(
            dimension_semantics=("parallel", "parallel"),
            vmem_limit_bytes=_vmem_limit_bytes(),
        ),
    )(qh, kh, vh, bias, wo_heads, bo)

    if not return_attn:
        return result

    out, attn = result
    if permute_attn:
        # Exact torch layout: stack(heads)=(H,B,Sq,Sk) then .permute(0,3,1,2).
        attn = jnp.transpose(attn, (1, 3, 0, 2))           # (H, Sk, B, Sq)
    return out, attn


# ----------------------------------------------------------------------------
# Deterministic parameter init (mirrors the PyTorch module's per-head Linears)
# ----------------------------------------------------------------------------
def init_params(key, d_model, num_heads):
    d = d_model // num_heads

    def linear(k, fan_in, fan_out):
        lim = 1.0 / math.sqrt(fan_in)
        kw, kb = jax.random.split(k)
        w = jax.random.uniform(kw, (fan_in, fan_out), jnp.float32, -lim, lim)
        b = jax.random.uniform(kb, (fan_out,), jnp.float32, -lim, lim)
        return w, b

    keys = jax.random.split(key, 3 * num_heads + 1)
    wq, bq, wk, bk, wv, bv = [], [], [], [], [], []
    for h in range(num_heads):
        w, b = linear(keys[3 * h + 0], d_model, d); wq.append(w); bq.append(b)
        w, b = linear(keys[3 * h + 1], d_model, d); wk.append(w); bk.append(b)
        w, b = linear(keys[3 * h + 2], d_model, d); wv.append(w); bv.append(b)
    wo, bo = linear(keys[-1], d_model, d_model)

    # Flat layouts: heads concatenated along the output columns of Wq/Wk/Wv
    # (matching torch.cat(head_outputs, -1)); Wo == mha_linear on that concat.
    return dict(
        wq=jnp.concatenate(wq, axis=1).astype(jnp.bfloat16),   # (D, D)
        bq=jnp.concatenate(bq)[None, :].astype(jnp.float32),   # (1, D)
        wk=jnp.concatenate(wk, axis=1).astype(jnp.bfloat16),
        bk=jnp.concatenate(bk)[None, :].astype(jnp.float32),
        wv=jnp.concatenate(wv, axis=1).astype(jnp.bfloat16),
        bv=jnp.concatenate(bv)[None, :].astype(jnp.float32),
        wo=wo.astype(jnp.bfloat16),                            # (D, D)
        bo=bo[None, :].astype(jnp.float32),                    # (1, D)
    )


# ----------------------------------------------------------------------------
# Pure-JAX reference (same math as the PyTorch module, f32)
# ----------------------------------------------------------------------------
def ref_multi_head_attention(pre_q, pre_k, pre_v, params, num_heads, mask=None):
    wq = params["wq"].astype(jnp.float32)
    wk = params["wk"].astype(jnp.float32)
    wv = params["wv"].astype(jnp.float32)
    wo = params["wo"].astype(jnp.float32)
    bq, bk, bv, bo = params["bq"], params["bk"], params["bv"], params["bo"]
    D = wq.shape[0]
    d = D // num_heads

    outs, attns = [], []
    for h in range(num_heads):
        sl = slice(h * d, (h + 1) * d)
        Q = pre_q @ wq[:, sl] + bq[:, sl]
        K = pre_k @ wk[:, sl] + bk[:, sl]
        V = pre_v @ wv[:, sl] + bv[:, sl]
        s = jnp.einsum("bqd,bkd->bqk", Q, K) / math.sqrt(d)
        if mask is not None:
            m = mask if mask.ndim == 3 else mask[:, None, :]
            s = jnp.where(m == 0, -1e9, s)
        p = jax.nn.softmax(s, axis=-1)
        outs.append(jnp.einsum("bqk,bkd->bqd", p, V))
        attns.append(p)

    out = jnp.concatenate(outs, axis=-1) @ wo + bo
    attn = jnp.stack(attns, axis=1)                     # (B, H, Sq, Sk)
    return out, attn


# ----------------------------------------------------------------------------
if __name__ == "__main__":
    B, S, d_model, num_heads = 2, 8, 32, 4

    key = jax.random.PRNGKey(0)
    kq, kk, kv, kp = jax.random.split(key, 4)
    pre_q = jax.random.normal(kq, (B, S, d_model), jnp.float32)
    pre_k = jax.random.normal(kk, (B, S, d_model), jnp.float32)
    pre_v = jax.random.normal(kv, (B, S, d_model), jnp.float32)
    # key-padding mask: last two key positions are padding
    key_mask = jnp.ones((B, S), jnp.float32).at[:, -2:].set(0.0)

    params = init_params(kp, d_model, num_heads)

    out, attn = multi_head_attention(pre_q, pre_k, pre_v, params, num_heads,
                                     mask=key_mask)
    out = jax.block_until_ready(out)
    attn = jax.block_until_ready(attn)

    ref_out, ref_attn = ref_multi_head_attention(pre_q, pre_k, pre_v, params,
                                                 num_heads, mask=key_mask)

    assert out.shape == (B, S, d_model)
    assert attn.shape == (B, num_heads, S, S)
    # bf16 MXU inputs / bf16 prob storage => loose-ish tolerances
    assert jnp.allclose(out, ref_out, atol=2e-2, rtol=2e-2), \
        float(jnp.max(jnp.abs(out - ref_out)))
    assert jnp.allclose(attn.astype(jnp.float32), ref_attn,
                        atol=1e-2, rtol=1e-2), \
        float(jnp.max(jnp.abs(attn.astype(jnp.float32) - ref_attn)))

    # The exact torch layout (stack(heads).permute(0, 3, 1, 2)) is available
    # via permute_attn=True; verify it matches the reference's permuted view.
    out2, attn_torch = multi_head_attention(pre_q, pre_k, pre_v, params,
                                            num_heads, mask=key_mask,
                                            permute_attn=True)
    attn_torch = jax.block_until_ready(attn_torch)
    assert attn_torch.shape == (num_heads, S, B, S)
    assert jnp.allclose(attn_torch.astype(jnp.float32),
                        jnp.transpose(ref_attn, (1, 3, 0, 2)),
                        atol=1e-2, rtol=1e-2)

    print("KERNEL_OK")
</pallas_src>

<mosaic_0001>
module attributes {stable_mosaic.version = 11 : i64} {
  func.func @_linear_kernel(%arg0: i32, %arg1: i32, %arg2: memref<1x8x32xbf16, #tpu.memory_space<vmem>>, %arg3: memref<32x32xbf16, #tpu.memory_space<vmem>>, %arg4: memref<1x32xf32, #tpu.memory_space<vmem>>, %arg5: memref<1x8x32xbf16, #tpu.memory_space<vmem>>) attributes {dimension_semantics = [#tpu.dimension_semantics<parallel>, #tpu.dimension_semantics<parallel>], iteration_bounds = array<i64: 2, 1>, scalar_prefetch = 0 : i64, scratch_operands = 0 : i64, tpu.core_type = #tpu.core_type<tc>, window_params = [{transform_indices = @transform_0, window_bounds = array<i64: 1, 8, 32>}, {pipeline_mode = #tpu.pipeline_mode<synchronous>, transform_indices = @transform_1, window_bounds = array<i64: 32, 32>}, {pipeline_mode = #tpu.pipeline_mode<synchronous>, transform_indices = @transform_2, window_bounds = array<i64: 1, 32>}, {transform_indices = @transform_3, window_bounds = array<i64: 1, 8, 32>}]} {
    %c0 = arith.constant 0 : index
    %c0_0 = arith.constant 0 : index
    %c0_1 = arith.constant 0 : index
    %0 = vector.load %arg2[%c0, %c0_0, %c0_1] : memref<1x8x32xbf16, #tpu.memory_space<vmem>>, vector<1x8x32xbf16>
    %1 = vector.shape_cast %0 : vector<1x8x32xbf16> to vector<8x32xbf16>
    %c0_2 = arith.constant 0 : index
    %c0_3 = arith.constant 0 : index
    %2 = vector.load %arg3[%c0_2, %c0_3] : memref<32x32xbf16, #tpu.memory_space<vmem>>, vector<32x32xbf16>
    %cst = arith.constant dense<0.000000e+00> : vector<8x32xf32>
    %3 = tpu.matmul %1, %2, %cst {dimension_numbers = #tpu.dot_dimension_numbers<[1], [0], [0], [1], [0, 0, 1, 1], [], []>} : vector<8x32xbf16>, vector<32x32xbf16>, vector<8x32xf32> -> vector<8x32xf32>
    %c0_4 = arith.constant 0 : index
    %c0_5 = arith.constant 0 : index
    %4 = vector.load %arg4[%c0_4, %c0_5] : memref<1x32xf32, #tpu.memory_space<vmem>>, vector<1x32xf32>
    %5 = vector.broadcast %4 : vector<1x32xf32> to vector<8x32xf32>
    %6 = arith.addf %3, %5 : vector<8x32xf32>
    %cst_6 = arith.constant 0.353553385 : f32
    %7 = vector.broadcast %cst_6 : f32 to vector<8x32xf32>
    %8 = arith.mulf %6, %7 : vector<8x32xf32>
    %9 = arith.truncf %8 : vector<8x32xf32> to vector<8x32xbf16>
    %c0_7 = arith.constant 0 : index
    %c0_8 = arith.constant 0 : index
    %c0_9 = arith.constant 0 : index
    %10 = vector.load %arg5[%c0_7, %c0_8, %c0_9] : memref<1x8x32xbf16, #tpu.memory_space<vmem>>, vector<1x8x32xbf16>
    %11 = vector.shape_cast %10 : vector<1x8x32xbf16> to vector<8x32xbf16>
    %12 = vector.shape_cast %9 : vector<8x32xbf16> to vector<1x8x32xbf16>
    tpu.vector_store %arg5[%c0_7, %c0_8, %c0_9], %12 {strides = array<i32>} : memref<1x8x32xbf16, #tpu.memory_space<vmem>>, vector<1x8x32xbf16>,
    return
  }
  func.func @transform_0(%arg0: i32, %arg1: i32) -> (i32, i32, i32) {
    %c0_i32 = arith.constant 0 : i32
    %c0_i32_0 = arith.constant 0 : i32
    return %arg0, %arg1, %c0_i32 : i32, i32, i32
  }
  func.func @transform_1(%arg0: i32, %arg1: i32) -> (i32, i32) {
    %c0_i32 = arith.constant 0 : i32
    %c0_i32_0 = arith.constant 0 : i32
    %c0_i32_1 = arith.constant 0 : i32
    return %c0_i32, %c0_i32_0 : i32, i32
  }
  func.func @transform_2(%arg0: i32, %arg1: i32) -> (i32, i32) {
    %c0_i32 = arith.constant 0 : i32
    %c0_i32_0 = arith.constant 0 : i32
    %c0_i32_1 = arith.constant 0 : i32
    return %c0_i32, %c0_i32_0 : i32, i32
  }
  func.func @transform_3(%arg0: i32, %arg1: i32) -> (i32, i32, i32) {
    %c0_i32 = arith.constant 0 : i32
    %c0_i32_0 = arith.constant 0 : i32
    return %arg0, %arg1, %c0_i32 : i32, i32, i32
  }
}

</mosaic_0001>

<bundles_post_ra>
// kernel: tpu_custom_call.1
= control target key start
LH: loop header
LB: loop body
LE: loop exit
PB: predicated region body
PF: predicated region fallthrough
CT: control target
= control target key end

     0   :  { %8 = vsyncpa [#allocation3], 0  ;;  %s791_s0 = inlined_call_operand.hbm [shape: bf16[2,8,32], index: 0, kind: input, shape index: {}]   ;;  %s792_s1 = inlined_call_operand.hbm [shape: bf16[32,32], index: 1, kind: input, shape index: {}]   ;;  %s793_s2 = inlined_call_operand.vmem [shape: f32[1,32], index: 2, kind: input, shape index: {}]   ;;  %s794_s3 = inlined_call_operand.hbm [shape: bf16[2,8,32], index: 3, kind: output, shape index: {}]  }
   0x1   :  { %10 = vsyncpa [#allocation3 + $0x1], 0 }
   0x2   :  { %11 = vsyncpa [#allocation6], 0 }
   0x3   :  { %12 = vsyncpa [#allocation4], 0 }
   0x4   :  { %14 = vsyncpa [#allocation4 + $0x1], 0  ;;  %s645_s12 = smov 0   ;;  %s647_s13 = smov 0  }
   0x5   :  { %s649_s14 = smov 0   ;;  %s651_s15 = smov 0  }
   0x6   :  { %s653_s16 = smov 0   ;;  %s655_s17 = smov 0  }
   0x7 LB: > { %s372_s18 = sadd.s32 4294967295, %s620_s17   ;;  %p374_p0 = scmp.ge.s32.totalorder %s620_s17, 1  ;;  %s620_s17 = sphi %s655_s17, %s20_s17   ;;  %s616_s16 = sphi %s653_s16, %s805_s16   ;;  %s612_s15 = sphi %s651_s15, %s804_s15   ;;  %s608_s14 = sphi %s649_s14, %s803_s14   ;;  %s604_s13 = sphi %s647_s13, %s802_s13   ;;  %s600_s12 = sphi %s645_s12, %s801_s12  }
   0x8   : > { %p677_p1 = scmp.eq.s32.totalorder %s372_s18, 0  ;;  %p135_p2 = scmp.lt.s32.totalorder %s620_s17, 3 }
   0x9   : > { %s146_s22 = sshll.u32 %s792_s1, 4  ;;  %s622_s24 = smov [#allocation5]   ;;  %s147_s22 = int_to_ptr.hbm [resolvable:$true] %s146_s22 }
   0xa   : > { %p685_p3 = pnand %p374_p0, %p135_p2  ;;  %s148_s25 = sshll.u32 %s622_s24, 4  ;;  %s149_s25 = int_to_ptr.vmem [resolvable:$true] %s148_s25 }
   0xb   : > { %p376_p6 = scmp.ge.s32.totalorder %s620_s17, 2  ;;  %s623_s26 = smov 64  }
   0xc   : > { %p406_p4 = pneg %p685_p3  ;;  %s624_s27 = smov 4  }
   0xd   : > { %s373_s28 = sadd.s32 4294967294, %s620_s17   ;;  %s32_s29 = sadd.s32 1, %s616_s16 }
   0xe   : > { %p407_p5 = pnand %p406_p4, %p677_p1  ;;  %s41_s30 = sadd.s32 1, %s608_s14 }
   0xf   : > { %p34_p7 = scmp.ge.s32.totalorder %s32_s29, 2  ;;  %p48_p8 = scmp.ne.s32.totalorder %s608_s14, %s604_s13 }
  0x10   : > { %409 = dma.hbm_to_vmem [thread:$0]  (!%p407_p5), %s147_s22, 256, %s149_s25, [#allocation6], %s623_s26, %s623_s26, %s624_s27  }
  0x11   : > { %p49_p9 = scmp.eq.s32.totalorder %s620_s17, 0  ;;  %p54_p10 = scmp.ne.s32.totalorder %s604_s13, %s600_s12 }
  0x12   : > { %s807_s29 = smov (%p34_p7, %s32_s29), 0  ;;  %p122_p13 = scmp.eq.s32.totalorder %s372_s18, 1 }
  0x13   : > { %p704_p11 = por %p49_p9, %p48_p8  ;;  %p710_p12 = por %p677_p1, %p54_p10 }
  0x14   : > { %s36_s6 = ssub.s32 %s616_s16, %s807_s29  ;;  %p128_p2 = scmp.eq.s32.totalorder %s373_s28, 1 }
  0x15   : > { %p39_p0 = scmp.eq.s32.totalorder %s36_s6, 0  ;;  %p716_p4 = por %p122_p13, %p48_p8 }
  0x16   : > { %p419_p5 = scmp.lt.s32.totalorder %s620_s17, 2  ;;  %p724_p7 = por %p128_p2, %p54_p10 }
  0x17   : > { %s722_s8 = scalar_select %p39_p0, %s608_s14, %s41_s30  }
  0x18   : > { %s165_s10 = sand.u32 1, %s608_s14   ;;  %s378_s20 = sshll.u32 %s616_s16, 2 }
  0x19   : > { %s377_s11 = sshll.u32 %s165_s10, 2  ;;  %s174_s18 = scalar_lea.hbm %s791_s0, %s378_s20 }
  0x1a   : > { %s169_s24 = scalar_lea.vmem [#allocation2], %s377_s11  ;;  %s176_s26 = sshll.u32 %s174_s18, 4  ;;  %s177_s26 = int_to_ptr.hbm [resolvable:$true] %s176_s26 }
  0x1b   : > { %s178_s25 = sshll.u32 %s169_s24, 4  ;;  %p411_p8 = pnand %p419_p5, %p704_p11  ;;  %s179_s25 = int_to_ptr.vmem [resolvable:$true] %s178_s25 }
  0x1c   : > { %s166_s27 = scalar_lea.sflag [#allocation3], %s165_s10  ;;  %187 = sbr.rel (%p685_p3) target bundleno = 180 (0xb4), region = 32 }
  0x1d   : > { %413 = dma.hbm_to_vmem [thread:$0]  (!%p411_p8), %s177_s26, 64, %s179_s25, %s166_s27  }
  0x1e   : > { %s738_s28 = sand.u32 (!%p685_p3), 1, %s604_s13  }
  0x1f   : > { %s380_s30 = sshll.u32 (!%p685_p3), %s738_s28, 2  ;;  %s190_s6 = scalar_lea.sflag (!%p685_p3), [#allocation3], %s738_s28 }
  0x20   : > { %s193_s11 = scalar_lea.vmem (!%p685_p3), [#allocation2], %s380_s30 }
  0x21   : > { %587 = dma.done.wait (%p710_p12), %s190_s6, 64  }
  0x22   : > { %589 = vsyncadd (%p710_p12), %s190_s6, 4294967232 }
  0x23   : > { %591 = dma.done.wait (%p677_p1), [#allocation6], 256  }
  0x24   : > { %593 = vsyncadd (%p677_p1), [#allocation6], 4294967040  ;;  %v397_v0 = vld [vmem:[#allocation5 + $0x8] sm:$0xff]  ;;  %v396_v1 = vld [vmem:[#allocation5] sm:$0xff]  ;;  %vm244_vm0 = vcmask 261120   ;;  %s393_s23 = sshll.u32 %s612_s15, 2 }
  0x25   : > { %254 = vmatpush.bf16.msra.mxu0 %v397_v0  ;;  %v223_v2 = vld [vmem:[%s193_s11] sm:$0xf]  ;;  %s277_s21 = scalar_lea.hbm %s794_s3, %s393_s23  ;;  %s221_s19 = scalar_lea.vmem [#allocation7], %s380_s30  ;;  %vm263_vm1 = vcmask 257024  }
  0x26   : > { %v473_v3 = vld [vmem:[%s793_s2] ss:$0 sm:$0xff]  ;;  %s279_s22 = sshll.u32 %s221_s19, 4  ;;  %s281_s18 = sshll.u32 %s277_s21, 4  ;;  %s280_s22 = int_to_ptr.vmem [resolvable:$true] %s279_s22  ;;  %s282_s18 = int_to_ptr.hbm [resolvable:$true] %s281_s18 }
  0x27   : > { %s266_s15 = scalar_lea.sflag [#allocation4], %s738_s28  ;;  %s548_s24 = sshra.s32 %s282_s18, 4  ;;  %s549_s24 = int_to_ptr.hbm [resolvable:$true] %s548_s24 }
  0x28   : > { %s550_s25 = scalar_lea.hbm %s549_s24, 4  ;;  %s554_s30 = scalar_lea.hbm %s794_s3, 8 }
  0x29   : > { %255 = vmatpush.bf16.msra.mxu0 %v396_v1  ;;  %p551_p1 = scmp.ne.s32.totalorder %s549_s24, %s550_s25  ;;  %p555_p10 = scmp.lt.s32.totalorder %s549_s24, %s794_s3 }
  0x2a   : > { %p556_p11 = scmp.lt.s32.totalorder %s554_s30, %s550_s25 }
  0x2b   : > { %p552_p3 = pnand %p551_p1, %p716_p4 }
  0x2c   : > { %391 = vmatmul.msk.bf16.vlgmr.msra.gmra.mxu0 %vm244_vm0, %v223_v2  ;;  %p557_p12 = por %p556_p11, %p555_p10 }
  0x2d   : > { %p553_p9 = pneg %p552_p3 }
  0x2f   : > { %p558_p13 = pnand %p557_p12, %p553_p9 }
  0xa9   : > { %v257_v4 = vpop.f32.mrf.mxu0 }
  0xaa   : > { %v258_v5 = vadd.f32 %v473_v3, %v257_v4 }
  0xac   : > { %v261_v6 = vmul.f32 0.35355338, %v258_v5 }
  0xae   : > { %v262_v7 = vpack.c.bf16 %v261_v6, %v261_v6 }
  0xb0   : > { %264 = vst.msk [vmem:[%s221_s19] sm:$0xf] %vm263_vm1, %v262_v7 }
  0xb1   : > { %v259_v8 = vpop.f32.mrf.mxu0 }
  0xb2   : > { %561 = shalt.err (!%p558_p13)
}
  0xb3   : > { %404 = dma.vmem_to_hbm [thread:$0]  (%p716_p4), %s280_s22, 64, %s282_s18, %s266_s15  }
  0xb4 PF: > { %s293_s28 = sand.u32 1, %s600_s12   ;;  %p415_p0 = pnand %p376_p6, %p724_p7 }
  0xb5   : > { %s294_s23 = scalar_lea.sflag [#allocation4], %s293_s28 }
  0xb6   : > { %p416_p2 = pneg %p415_p0 }
  0xb8   : > { %595 = dma.done.wait (%p416_p2), %s294_s23, 64  }
  0xb9   : > { %597 = vsyncadd (%p416_p2), %s294_s23, 4294967232  ;;  %s20_s17 = sadd.s32 1, %s620_s17   ;;  %s801_s12 = smov %s604_s13 }
  0xba   : > { %p17_p5 = scmp.ge.s32.totalorder %s20_s17, 4   ;;  %s802_s13 = smov %s608_s14 }
  0xbb   : > { %s803_s14 = smov %s722_s8  ;;  %s804_s15 = smov %s616_s16 }
  0xbc   : > { %s805_s16 = smov %s807_s29  ;;  %19 = sbr.rel (!%p17_p5) target bundleno = 7 (0x7), region = 81 }
  0xc1   :  { %300 = vsyncpa [#allocation3], 1 }
  0xc2   :  { %302 = vsyncpa [#allocation3 + $0x1], 1 }
  0xc3   :  { %303 = vsyncpa [#allocation6], 1 }
  0xc4   :  { %304 = vsyncpa [#allocation4], 1 }
  0xc5   :  { %306 = vsyncpa [#allocation4 + $0x1], 1 }

</bundles_post_ra>
